<compile_context>
chip_gen: v5e
topology: v5e:2x2
jax: 0.10.0
libtpu: 0.0.40
codegen_flags: <defaults>
</compile_context>

<pallas_src>
import functools

import jax
import jax.numpy as jnp
from jax import lax
from jax.experimental import pallas as pl
from jax.experimental.pallas import tpu as pltpu


def _round_up(x, m):
    return ((x + m - 1) // m) * m


def _powernet_kernel(n_steps,
                     x_ref, w_in_ref, b_in_ref,
                     w_res_ref, b_res_ref,
                     w_out_ref, b_out_ref,
                     o_ref):
    # fc_in + ReLU: bf16 MXU operands, f32 accumulation, f32 elementwise tail.
    h = jnp.dot(x_ref[...].astype(jnp.bfloat16), w_in_ref[...],
                preferred_element_type=jnp.float32)
    h = jnp.maximum(h + b_in_ref[...], 0.0)

    # Reservoir recurrence. Weight and (1, res) bias are read from their VMEM
    # refs INSIDE each step (not hoisted, not pre-broadcast) so nothing big
    # stays live across the serially-dependent chain.
    def step(_, h):
        return jnp.maximum(
            jnp.dot(h.astype(jnp.bfloat16), w_res_ref[...],
                    preferred_element_type=jnp.float32) + b_res_ref[...],
            0.0,
        )

    if n_steps > 0:
        if n_steps <= 4:
            # Small static trip count: full unroll, full scheduler visibility.
            for _ in range(n_steps):
                h = step(0, h)
        else:
            # Larger trip counts: bounded live ranges, partial unroll.
            h = lax.fori_loop(0, n_steps, step, h, unroll=2)

    # fc_out (no activation). Output columns were lane-padded to a multiple of
    # 128 at init time -> unmasked vst; the wrapper slices the real outputs.
    o_ref[...] = (
        jnp.dot(h.astype(jnp.bfloat16), w_out_ref[...],
                preferred_element_type=jnp.float32) + b_out_ref[...]
    ).astype(o_ref.dtype)


def powernet_forward(x, params, n_steps, *, max_tile_b=128):
    """x: [B, input_size] float32. params: dict from init_params (pre-padded,
    pre-transposed, bf16 weights). max_tile_b: 128 for v5e; sweep up to 256 on
    v6e/v7x (256x256 MXUs) for throughput batches."""
    w_in, b_in = params["w_in"], params["b_in"]
    w_res, b_res = params["w_res"], params["b_res"]
    w_out, b_out = params["w_out"], params["b_out"]   # already lane-padded
    output_size = params["output_size"]

    batch, input_size = x.shape
    res = w_res.shape[0]
    out_pad = w_out.shape[1]

    # Batch tiling: multiple of 16 (bf16 sublane packing). When the batch is
    # large enough, force >= 2 grid steps so v7x's second TensorCore gets work
    # under dimension_semantics=("parallel",); neutral on single-TC v5e/v6e.
    b16 = _round_up(max(batch, 1), 16)
    tile_b = min(max_tile_b, b16)
    if b16 >= 32 and b16 <= tile_b:
        tile_b = _round_up(b16 // 2, 16)
    batch_pad = _round_up(b16, tile_b)

    x_p = jnp.pad(x, ((0, batch_pad - batch), (0, 0))) if batch_pad != batch else x

    grid = (batch_pad // tile_b,)
    kernel = functools.partial(_powernet_kernel, n_steps)

    # VMEM budget from the actual footprint: single-buffered resident weights
    # + double-buffered x/out tiles + activation scratch, with headroom,
    # capped well under v7x's 64 MiB physical VMEM.
    weight_bytes = sum(int(a.size) * a.dtype.itemsize
                       for a in (w_in, b_in, w_res, b_res, w_out, b_out))
    io_bytes = 2 * tile_b * (input_size + out_pad) * 4
    act_bytes = 3 * tile_b * res * 4
    vmem_bytes = int(1.5 * (weight_bytes + io_bytes + act_bytes)) + (2 << 20)
    vmem_bytes = min(max(vmem_bytes, 4 << 20), 48 << 20)

    flops = 2 * batch_pad * (input_size * res + n_steps * res * res + res * out_pad)
    bytes_accessed = int(weight_bytes
                         + x_p.size * x_p.dtype.itemsize
                         + batch_pad * out_pad * 4)

    # Constant index_map -> never re-fetched; single-buffer to halve the
    # resident-weight VMEM footprint.
    resident = dict(pipeline_mode=pl.Buffered(1))

    out = pl.pallas_call(
        kernel,
        out_shape=jax.ShapeDtypeStruct((batch_pad, out_pad), jnp.float32),
        grid=grid,
        in_specs=[
            pl.BlockSpec((tile_b, input_size), lambda i: (i, 0)),           # x (tiled)
            pl.BlockSpec((input_size, res), lambda i: (0, 0), **resident),  # w_in
            pl.BlockSpec((1, res), lambda i: (0, 0), **resident),           # b_in
            pl.BlockSpec((res, res), lambda i: (0, 0), **resident),         # w_res
            pl.BlockSpec((1, res), lambda i: (0, 0), **resident),           # b_res
            pl.BlockSpec((res, out_pad), lambda i: (0, 0), **resident),     # w_out
            pl.BlockSpec((1, out_pad), lambda i: (0, 0), **resident),       # b_out
        ],
        out_specs=pl.BlockSpec((tile_b, out_pad), lambda i: (i, 0)),
        compiler_params=pltpu.CompilerParams(
            dimension_semantics=("parallel",),
            vmem_limit_bytes=vmem_bytes,
        ),
        cost_estimate=pl.CostEstimate(
            flops=flops, transcendentals=0, bytes_accessed=bytes_accessed),
    )(x_p, w_in, b_in, w_res, b_res, w_out, b_out)

    return out[:batch, :output_size]


def init_params(key, input_size, output_size, reservoir_size):
    """Deterministic init mirroring nn.Linear shapes. Weights pre-transposed
    to [in, out], stored bf16; fc_out pre-padded to a lane multiple of 128."""
    k = jax.random.split(key, 6)

    def uniform(k_, shape, fan_in):
        bound = 1.0 / jnp.sqrt(jnp.float32(fan_in))
        return jax.random.uniform(k_, shape, jnp.float32, -bound, bound)

    out_pad = _round_up(output_size, 128)
    w_out = uniform(k[4], (reservoir_size, output_size), reservoir_size)
    b_out = uniform(k[5], (1, output_size), reservoir_size)

    return {
        # nn.Linear(input_size, reservoir_size): W [res, in] -> transposed [in, res]
        "w_in": uniform(k[0], (input_size, reservoir_size), input_size).astype(jnp.bfloat16),
        "b_in": uniform(k[1], (1, reservoir_size), input_size),
        # nn.Linear(reservoir_size, reservoir_size)
        "w_res": uniform(k[2], (reservoir_size, reservoir_size), reservoir_size).astype(jnp.bfloat16),
        "b_res": uniform(k[3], (1, reservoir_size), reservoir_size),
        # nn.Linear(reservoir_size, output_size): pre-padded + pre-cast once.
        "w_out": jnp.pad(w_out, ((0, 0), (0, out_pad - output_size))).astype(jnp.bfloat16),
        "b_out": jnp.pad(b_out, ((0, 0), (0, out_pad - output_size))),
        "output_size": output_size,
    }


def powernet_reference(x, params, n_steps):
    """Pure-JAX reference doing the same bf16-operand / f32-accumulate math."""
    h = jnp.maximum(
        jnp.dot(x.astype(jnp.bfloat16), params["w_in"],
                preferred_element_type=jnp.float32) + params["b_in"], 0.0)
    for _ in range(n_steps):
        h = jnp.maximum(
            jnp.dot(h.astype(jnp.bfloat16), params["w_res"],
                    preferred_element_type=jnp.float32) + params["b_res"], 0.0)
    out = (jnp.dot(h.astype(jnp.bfloat16), params["w_out"],
                   preferred_element_type=jnp.float32) + params["b_out"])
    return out[:, :params["output_size"]]


if __name__ == "__main__":
    input_size = 32
    output_size = 16
    reservoir_size = 256
    batch = 8
    n_steps = 3

    key = jax.random.PRNGKey(0)
    k_params, k_x = jax.random.split(key)

    params = init_params(k_params, input_size, output_size, reservoir_size)
    x = jax.random.normal(k_x, (batch, input_size), jnp.float32)

    out = powernet_forward(x, params, n_steps)
    out = jax.block_until_ready(out)

    ref = powernet_reference(x, params, n_steps)
    assert out.shape == (batch, output_size)
    assert jnp.allclose(out, ref, atol=1e-2, rtol=1e-2), "mismatch vs reference"

    print("KERNEL_OK")
</pallas_src>

<mosaic_0001>
module attributes {stable_mosaic.version = 11 : i64} {
  func.func @_powernet_kernel(%arg0: i32, %arg1: memref<16x32xf32, #tpu.memory_space<vmem>>, %arg2: memref<32x256xbf16, #tpu.memory_space<vmem>>, %arg3: memref<1x256xf32, #tpu.memory_space<vmem>>, %arg4: memref<256x256xbf16, #tpu.memory_space<vmem>>, %arg5: memref<1x256xf32, #tpu.memory_space<vmem>>, %arg6: memref<256x128xbf16, #tpu.memory_space<vmem>>, %arg7: memref<1x128xf32, #tpu.memory_space<vmem>>, %arg8: memref<16x128xf32, #tpu.memory_space<vmem>>) attributes {dimension_semantics = [#tpu.dimension_semantics<parallel>], iteration_bounds = array<i64: 1>, scalar_prefetch = 0 : i64, scratch_operands = 0 : i64, tpu.core_type = #tpu.core_type<tc>, window_params = [{transform_indices = @transform_0, window_bounds = array<i64: 16, 32>}, {pipeline_mode = #tpu.pipeline_mode<synchronous>, transform_indices = @transform_1, window_bounds = array<i64: 32, 256>}, {pipeline_mode = #tpu.pipeline_mode<synchronous>, transform_indices = @transform_2, window_bounds = array<i64: 1, 256>}, {pipeline_mode = #tpu.pipeline_mode<synchronous>, transform_indices = @transform_3, window_bounds = array<i64: 256, 256>}, {pipeline_mode = #tpu.pipeline_mode<synchronous>, transform_indices = @transform_4, window_bounds = array<i64: 1, 256>}, {pipeline_mode = #tpu.pipeline_mode<synchronous>, transform_indices = @transform_5, window_bounds = array<i64: 256, 128>}, {pipeline_mode = #tpu.pipeline_mode<synchronous>, transform_indices = @transform_6, window_bounds = array<i64: 1, 128>}, {transform_indices = @transform_7, window_bounds = array<i64: 16, 128>}]} {
    %c0 = arith.constant 0 : index
    %c0_0 = arith.constant 0 : index
    %0 = vector.load %arg1[%c0, %c0_0] : memref<16x32xf32, #tpu.memory_space<vmem>>, vector<16x32xf32>
    %1 = arith.truncf %0 : vector<16x32xf32> to vector<16x32xbf16>
    %c0_1 = arith.constant 0 : index
    %c0_2 = arith.constant 0 : index
    %2 = vector.load %arg2[%c0_1, %c0_2] : memref<32x256xbf16, #tpu.memory_space<vmem>>, vector<32x256xbf16>
    %cst = arith.constant dense<0.000000e+00> : vector<16x256xf32>
    %3 = tpu.matmul %1, %2, %cst {dimension_numbers = #tpu.dot_dimension_numbers<[1], [0], [0], [1], [0, 0, 1, 1], [], []>} : vector<16x32xbf16>, vector<32x256xbf16>, vector<16x256xf32> -> vector<16x256xf32>
    %c0_3 = arith.constant 0 : index
    %c0_4 = arith.constant 0 : index
    %4 = vector.load %arg3[%c0_3, %c0_4] : memref<1x256xf32, #tpu.memory_space<vmem>>, vector<1x256xf32>
    %5 = vector.broadcast %4 : vector<1x256xf32> to vector<16x256xf32>
    %6 = arith.addf %3, %5 : vector<16x256xf32>
    %cst_5 = arith.constant 0.000000e+00 : f32
    %7 = vector.broadcast %cst_5 : f32 to vector<16x256xf32>
    %8 = arith.maximumf %6, %7 : vector<16x256xf32>
    %9 = arith.truncf %8 : vector<16x256xf32> to vector<16x256xbf16>
    %c0_6 = arith.constant 0 : index
    %c0_7 = arith.constant 0 : index
    %10 = vector.load %arg4[%c0_6, %c0_7] : memref<256x256xbf16, #tpu.memory_space<vmem>>, vector<256x256xbf16>
    %cst_8 = arith.constant dense<0.000000e+00> : vector<16x256xf32>
    %11 = tpu.matmul %9, %10, %cst_8 {dimension_numbers = #tpu.dot_dimension_numbers<[1], [0], [0], [1], [0, 0, 1, 1], [], []>} : vector<16x256xbf16>, vector<256x256xbf16>, vector<16x256xf32> -> vector<16x256xf32>
    %c0_9 = arith.constant 0 : index
    %c0_10 = arith.constant 0 : index
    %12 = vector.load %arg5[%c0_9, %c0_10] : memref<1x256xf32, #tpu.memory_space<vmem>>, vector<1x256xf32>
    %13 = vector.broadcast %12 : vector<1x256xf32> to vector<16x256xf32>
    %14 = arith.addf %11, %13 : vector<16x256xf32>
    %cst_11 = arith.constant 0.000000e+00 : f32
    %15 = vector.broadcast %cst_11 : f32 to vector<16x256xf32>
    %16 = arith.maximumf %14, %15 : vector<16x256xf32>
    %17 = arith.truncf %16 : vector<16x256xf32> to vector<16x256xbf16>
    %c0_12 = arith.constant 0 : index
    %c0_13 = arith.constant 0 : index
    %18 = vector.load %arg4[%c0_12, %c0_13] : memref<256x256xbf16, #tpu.memory_space<vmem>>, vector<256x256xbf16>
    %cst_14 = arith.constant dense<0.000000e+00> : vector<16x256xf32>
    %19 = tpu.matmul %17, %18, %cst_14 {dimension_numbers = #tpu.dot_dimension_numbers<[1], [0], [0], [1], [0, 0, 1, 1], [], []>} : vector<16x256xbf16>, vector<256x256xbf16>, vector<16x256xf32> -> vector<16x256xf32>
    %c0_15 = arith.constant 0 : index
    %c0_16 = arith.constant 0 : index
    %20 = vector.load %arg5[%c0_15, %c0_16] : memref<1x256xf32, #tpu.memory_space<vmem>>, vector<1x256xf32>
    %21 = vector.broadcast %20 : vector<1x256xf32> to vector<16x256xf32>
    %22 = arith.addf %19, %21 : vector<16x256xf32>
    %cst_17 = arith.constant 0.000000e+00 : f32
    %23 = vector.broadcast %cst_17 : f32 to vector<16x256xf32>
    %24 = arith.maximumf %22, %23 : vector<16x256xf32>
    %25 = arith.truncf %24 : vector<16x256xf32> to vector<16x256xbf16>
    %c0_18 = arith.constant 0 : index
    %c0_19 = arith.constant 0 : index
    %26 = vector.load %arg4[%c0_18, %c0_19] : memref<256x256xbf16, #tpu.memory_space<vmem>>, vector<256x256xbf16>
    %cst_20 = arith.constant dense<0.000000e+00> : vector<16x256xf32>
    %27 = tpu.matmul %25, %26, %cst_20 {dimension_numbers = #tpu.dot_dimension_numbers<[1], [0], [0], [1], [0, 0, 1, 1], [], []>} : vector<16x256xbf16>, vector<256x256xbf16>, vector<16x256xf32> -> vector<16x256xf32>
    %c0_21 = arith.constant 0 : index
    %c0_22 = arith.constant 0 : index
    %28 = vector.load %arg5[%c0_21, %c0_22] : memref<1x256xf32, #tpu.memory_space<vmem>>, vector<1x256xf32>
    %29 = vector.broadcast %28 : vector<1x256xf32> to vector<16x256xf32>
    %30 = arith.addf %27, %29 : vector<16x256xf32>
    %cst_23 = arith.constant 0.000000e+00 : f32
    %31 = vector.broadcast %cst_23 : f32 to vector<16x256xf32>
    %32 = arith.maximumf %30, %31 : vector<16x256xf32>
    %33 = arith.truncf %32 : vector<16x256xf32> to vector<16x256xbf16>
    %c0_24 = arith.constant 0 : index
    %c0_25 = arith.constant 0 : index
    %34 = vector.load %arg6[%c0_24, %c0_25] : memref<256x128xbf16, #tpu.memory_space<vmem>>, vector<256x128xbf16>
    %cst_26 = arith.constant dense<0.000000e+00> : vector<16x128xf32>
    %35 = tpu.matmul %33, %34, %cst_26 {dimension_numbers = #tpu.dot_dimension_numbers<[1], [0], [0], [1], [0, 0, 1, 1], [], []>} : vector<16x256xbf16>, vector<256x128xbf16>, vector<16x128xf32> -> vector<16x128xf32>
    %c0_27 = arith.constant 0 : index
    %c0_28 = arith.constant 0 : index
    %36 = vector.load %arg7[%c0_27, %c0_28] : memref<1x128xf32, #tpu.memory_space<vmem>>, vector<1x128xf32>
    %37 = vector.broadcast %36 : vector<1x128xf32> to vector<16x128xf32>
    %38 = arith.addf %35, %37 : vector<16x128xf32>
    %c0_29 = arith.constant 0 : index
    %c0_30 = arith.constant 0 : index
    %39 = vector.load %arg8[%c0_29, %c0_30] : memref<16x128xf32, #tpu.memory_space<vmem>>, vector<16x128xf32>
    tpu.vector_store %arg8[%c0_29, %c0_30], %38 {strides = array<i32>} : memref<16x128xf32, #tpu.memory_space<vmem>>, vector<16x128xf32>,
    return
  }
  func.func @transform_0(%arg0: i32) -> (i32, i32) {
    %c0_i32 = arith.constant 0 : i32
    %c0_i32_0 = arith.constant 0 : i32
    return %arg0, %c0_i32 : i32, i32
  }
  func.func @transform_1(%arg0: i32) -> (i32, i32) {
    %c0_i32 = arith.constant 0 : i32
    %c0_i32_0 = arith.constant 0 : i32
    %c0_i32_1 = arith.constant 0 : i32
    return %c0_i32, %c0_i32_0 : i32, i32
  }
  func.func @transform_2(%arg0: i32) -> (i32, i32) {
    %c0_i32 = arith.constant 0 : i32
    %c0_i32_0 = arith.constant 0 : i32
    %c0_i32_1 = arith.constant 0 : i32
    return %c0_i32, %c0_i32_0 : i32, i32
  }
  func.func @transform_3(%arg0: i32) -> (i32, i32) {
    %c0_i32 = arith.constant 0 : i32
    %c0_i32_0 = arith.constant 0 : i32
    %c0_i32_1 = arith.constant 0 : i32
    return %c0_i32, %c0_i32_0 : i32, i32
  }
  func.func @transform_4(%arg0: i32) -> (i32, i32) {
    %c0_i32 = arith.constant 0 : i32
    %c0_i32_0 = arith.constant 0 : i32
    %c0_i32_1 = arith.constant 0 : i32
    return %c0_i32, %c0_i32_0 : i32, i32
  }
  func.func @transform_5(%arg0: i32) -> (i32, i32) {
    %c0_i32 = arith.constant 0 : i32
    %c0_i32_0 = arith.constant 0 : i32
    %c0_i32_1 = arith.constant 0 : i32
    return %c0_i32, %c0_i32_0 : i32, i32
  }
  func.func @transform_6(%arg0: i32) -> (i32, i32) {
    %c0_i32 = arith.constant 0 : i32
    %c0_i32_0 = arith.constant 0 : i32
    %c0_i32_1 = arith.constant 0 : i32
    return %c0_i32, %c0_i32_0 : i32, i32
  }
  func.func @transform_7(%arg0: i32) -> (i32, i32) {
    %c0_i32 = arith.constant 0 : i32
    %c0_i32_0 = arith.constant 0 : i32
    return %arg0, %c0_i32 : i32, i32
  }
}

</mosaic_0001>

<bundles_post_ra>
// kernel: tpu_custom_call.1
= control target key start
LH: loop header
LB: loop body
LE: loop exit
PB: predicated region body
PF: predicated region fallthrough
CT: control target
= control target key end

     0   :  { %12 = vsyncpa [#allocation3], 0  ;;  %s1431_s0 = inlined_call_operand.hbm [shape: f32[16,32], index: 0, kind: input, shape index: {}]   ;;  %s1432_s1 = inlined_call_operand.hbm [shape: bf16[32,256], index: 1, kind: input, shape index: {}]   ;;  %s1433_s2 = inlined_call_operand.hbm [shape: f32[1,256], index: 2, kind: input, shape index: {}]   ;;  %s1434_s3 = inlined_call_operand.hbm [shape: bf16[256,256], index: 3, kind: input, shape index: {}]   ;;  %s1435_s4 = inlined_call_operand.vmem [shape: f32[1,256], index: 4, kind: input, shape index: {}]   ;;  %s1436_s5 = inlined_call_operand.hbm [shape: bf16[256,128], index: 5, kind: input, shape index: {}]   ;;  %s1437_s6 = inlined_call_operand.vmem [shape: f32[1,128], index: 6, kind: input, shape index: {}]   ;;  %s1438_s7 = inlined_call_operand.hbm [shape: f32[16,128], index: 7, kind: output, shape index: {}]  }
   0x1   :  { %13 = vsyncpa [#allocation6], 0 }
   0x2   :  { %14 = vsyncpa [#allocation9], 0 }
   0x3   :  { %15 = vsyncpa [#allocation4], 0  ;;  %s33_s26 = sshll.u32 %s1432_s1, 4  ;;  %s1167_s27 = smov [#allocation5]   ;;  %s34_s26 = int_to_ptr.hbm [resolvable:$true] %s33_s26 }
   0x4   :  { %s35_s28 = sshll.u32 %s1167_s27, 4  ;;  %s57_s8 = sshll.u32 %s1434_s3, 4  ;;  %s36_s28 = int_to_ptr.vmem [resolvable:$true] %s35_s28  ;;  %s58_s8 = int_to_ptr.hbm [resolvable:$true] %s57_s8 }
   0x5   :  { %s1168_s9 = smov 128   ;;  %s1169_s10 = smov 8  }
   0x6   :  { %41 = dma.hbm_to_vmem [thread:$0]  %s34_s26, 512, %s36_s28, [#allocation6], %s1168_s9, %s1168_s9, %s1169_s10  }
   0x7   :  { %s1170_s11 = smov [#allocation8]   ;;  %s20_s1 = sshll.u32 %s1431_s0, 4  ;;  %s21_s1 = int_to_ptr.hbm [resolvable:$true] %s20_s1 }
   0x8   :  { %s59_s12 = sshll.u32 %s1170_s11, 4  ;;  %s47_s16 = sshll.u32 %s1433_s2, 4  ;;  %s60_s12 = int_to_ptr.vmem [resolvable:$true] %s59_s12  ;;  %s48_s16 = int_to_ptr.hbm [resolvable:$true] %s47_s16 }
   0x9   :  { %65 = dma.hbm_to_vmem [thread:$0]  %s58_s8, 4096, %s60_s12, [#allocation9], %s1168_s9, %s1168_s9, %s1169_s10  }
   0xa   :  { %s1171_s17 = smov [#allocation2]   ;;  %s1172_s19 = smov [#allocation7]  }
   0xb   :  { %s22_s18 = sshll.u32 %s1171_s17, 4  ;;  %s49_s0 = sshll.u32 %s1172_s19, 4  ;;  %s23_s18 = int_to_ptr.vmem [resolvable:$true] %s22_s18  ;;  %s50_s0 = int_to_ptr.vmem [resolvable:$true] %s49_s0 }
   0xc   :  { %28 = dma.hbm_to_vmem [thread:$0]  %s21_s1, 256, %s23_s18, [#allocation3], %s1168_s9, %s1168_s9, %s1169_s10  }
   0xd   :  { %s72_s22 = sshll.u32 %s1436_s5, 4  ;;  %s1173_s23 = smov [#allocation10]   ;;  %s73_s22 = int_to_ptr.hbm [resolvable:$true] %s72_s22 }
   0xe   :  { %52 = dma.hbm_to_vmem [thread:$0]  %s48_s16, 32, %s50_s0, [#allocation6]  }
   0xf   :  { %s74_s24 = sshll.u32 %s1173_s23, 4  ;;  %s1174_s2 = smov 64   ;;  %s75_s24 = int_to_ptr.vmem [resolvable:$true] %s74_s24 }
  0x10   :  { %s1175_s25 = smov 4  }
  0x11   :  { %80 = dma.hbm_to_vmem [thread:$0]  %s73_s22, 2048, %s75_s24, [#allocation9], %s1174_s2, %s1174_s2, %s1175_s25  }
  0x12   :  { %1159 = dma.done.wait [#allocation3], 256  }
  0x13   :  { %1160 = vsyncadd [#allocation3], 4294967040 }
  0x14   :  { %1161 = dma.done.wait [#allocation6], 544  }
  0x15   :  { %1162 = vsyncadd [#allocation6], 4294966752 }
  0x16   :  { %1163 = dma.done.wait [#allocation9], 6144  }
  0x17   :  { %1164 = vsyncadd [#allocation9], 4294961152  ;;  %v752_v0 = vld [vmem:[#allocation5 + $0x10] sm:$0xf]  ;;  %v955_v1 = vld [vmem:[#allocation5 + $0x14] sm:$0xf0] }
  0x18   :  { %v954_v2 = vld [vmem:[#allocation5 + $0x14] sm:$0xf]  ;;  %v753_v3 = vor.u32 %v955_v1, %v752_v0  ;;  %v754_v4 = vld [vmem:[#allocation5 + $0x18] sm:$0xf0]  ;;  %v744_v5 = vld [vmem:[#allocation5] sm:$0xf] }
  0x19   :  { %v953_v6 = vld [vmem:[#allocation5 + $0x4] sm:$0xf0]  ;;  %v757_v7 = vor.u32 %v954_v2, %v754_v4  ;;  %v952_v8 = vld [vmem:[#allocation5 + $0x4] sm:$0xf]  ;;  %v746_v9 = vld [vmem:[#allocation5 + $0x8] sm:$0xf0] }
  0x1a   :  { %v104_v10 = vld [vmem:[#allocation2] sm:$0xff]  ;;  %147 = vmatpush.bf16.msra.mxu0 %v753_v3  ;;  %v745_v11 = vor.u32 %v953_v6, %v744_v5  ;;  %v105_v12 = vld [vmem:[#allocation2 + $0x8] sm:$0xff]  ;;  %vm137_vm0 = vcmask 261120   ;;  %v749_v15 = vor.u32 %v952_v8, %v746_v9  ;;  %v810_v27 = vld [vmem:[#allocation8 + $0x60] sm:$0xf]  ;;  %s1176_s28 = smov [#allocation11]  }
  0x1b   :  { %v818_v13 = vld [vmem:[#allocation8 + $0x70] sm:$0xf]  ;;  %v971_v14 = vld [vmem:[#allocation8 + $0x74] sm:$0xf0]  ;;  %161 = vmatpush.bf16.msra.mxu1 %v757_v7  ;;  %v970_v19 = vld [vmem:[#allocation8 + $0x74] sm:$0xf]  ;;  %v106_v24 = vpack.c.bf16 %v105_v12, %v104_v10 }
  0x1c   :  { %v1241_v16 = vor.u32 %v971_v14, %v818_v13  ;;  %v882_v17 = vld [vmem:[#allocation8 + $0xf0] sm:$0xf]  ;;  %v987_v18 = vld [vmem:[#allocation8 + $0xf4] sm:$0xf0]  ;;  %v820_v21 = vld [vmem:[#allocation8 + $0x78] sm:$0xf0] }
  0x1d   :  { %v1243_v20 = vor.u32 %v987_v18, %v882_v17  ;;  %v986_v22 = vld [vmem:[#allocation8 + $0xf4] sm:$0xf]  ;;  %v884_v23 = vld [vmem:[#allocation8 + $0xf8] sm:$0xf0]  ;;  %v1246_v25 = vor.u32 %v970_v19, %v820_v21  ;;  %v969_v28 = vld [vmem:[#allocation8 + $0x64] sm:$0xf0] }
  0x1e   :  { %373 = vmatpush.bf16.msra.mxu2 %v1241_v16  ;;  %v1248_v26 = vor.u32 %v986_v22, %v884_v23  ;;  %v874_v29 = vld [vmem:[#allocation8 + $0xe0] sm:$0xf]  ;;  %148 = vmatpush.bf16.msra.mxu0 %v745_v11  ;;  %v1251_v30 = vor.u32 %v969_v28, %v810_v27  ;;  %v985_v31 = vld [vmem:[#allocation8 + $0xe4] sm:$0xf0]  ;;  %v968_v32 = vld [vmem:[#allocation8 + $0x64] sm:$0xf] }
  0x1f   :  { %387 = vmatpush.bf16.msra.mxu3 %v1243_v20  ;;  %v812_v33 = vld [vmem:[#allocation8 + $0x68] sm:$0xf0]  ;;  %162 = vmatpush.bf16.msra.mxu1 %v749_v15  ;;  %v1254_v34 = vor.u32 %v985_v31, %v874_v29  ;;  %v984_v36 = vld [vmem:[#allocation8 + $0xe4] sm:$0xf]  ;;  %v802_v38 = vld [vmem:[#allocation8 + $0x50] sm:$0xf] }
  0x20   :  { %v1256_v35 = vor.u32 %v968_v32, %v812_v33  ;;  %v876_v37 = vld [vmem:[#allocation8 + $0xe8] sm:$0xf0]  ;;  %v967_v40 = vld [vmem:[#allocation8 + $0x54] sm:$0xf0]  ;;  %v866_v41 = vld [vmem:[#allocation8 + $0xd0] sm:$0xf] }
  0x21   :  { %v1259_v39 = vor.u32 %v984_v36, %v876_v37  ;;  %v983_v42 = vld [vmem:[#allocation8 + $0xd4] sm:$0xf0]  ;;  %758 = vmatmul.msk.bf16.vlgmr.msra.gmra.mxu0 %vm137_vm0, %v106_v24  ;;  %v1263_v43 = vor.u32 %v967_v40, %v802_v38  ;;  %v966_v44 = vld [vmem:[#allocation8 + $0x54] sm:$0xf]  ;;  %v804_v45 = vld [vmem:[#allocation8 + $0x58] sm:$0xf0] }
  0x22   :  { %401 = vmatpush.bf16.msrb.mxu0 %v1246_v25  ;;  %374 = vmatpush.bf16.msra.mxu2 %v1251_v30  ;;  %v982_v46 = vld [vmem:[#allocation8 + $0xd4] sm:$0xf]  ;;  %v1267_v47 = vor.u32 %v983_v42, %v866_v41  ;;  %v868_v48 = vld [vmem:[#allocation8 + $0xd8] sm:$0xf0]  ;;  %v794_v49 = vld [vmem:[#allocation8 + $0x40] sm:$0xf]  ;;  %v1270_v51 = vor.u32 %v966_v44, %v804_v45 }
  0x23   :  { %415 = vmatpush.bf16.msrb.mxu1 %v1248_v26  ;;  %388 = vmatpush.bf16.msra.mxu3 %v1254_v34  ;;  %v965_v50 = vld [vmem:[#allocation8 + $0x44] sm:$0xf0]  ;;  %v858_v52 = vld [vmem:[#allocation8 + $0xc0] sm:$0xf]  ;;  %v1273_v54 = vor.u32 %v982_v46, %v868_v48  ;;  %v964_v55 = vld [vmem:[#allocation8 + $0x44] sm:$0xf] }
  0x24   :  { %759 = vmatmul.msk.bf16.vlgmr.msra.gmra.mxu1 %vm137_vm0, %v106_v24  ;;  %v981_v53 = vld [vmem:[#allocation8 + $0xc4] sm:$0xf0]  ;;  %v796_v56 = vld [vmem:[#allocation8 + $0x48] sm:$0xf0]  ;;  %v1276_v57 = vor.u32 %v965_v50, %v794_v49  ;;  %v980_v58 = vld [vmem:[#allocation8 + $0xc4] sm:$0xf] }
  0x25   :  { %v860_v59 = vld [vmem:[#allocation8 + $0xc8] sm:$0xf0]  ;;  %v1279_v60 = vor.u32 %v981_v53, %v858_v52  ;;  %v1282_v61 = vor.u32 %v964_v55, %v796_v56  ;;  %v786_v63 = vld [vmem:[#allocation8 + $0x30] sm:$0xf]  ;;  %v963_v0 = vld [vmem:[#allocation8 + $0x34] sm:$0xf0] }
  0x26   :  { %402 = vmatpush.bf16.msrb.mxu0 %v1256_v35  ;;  %375 = vmatpush.bf16.msra.mxu2 %v1263_v43  ;;  %v1285_v62 = vor.u32 %v980_v58, %v860_v59  ;;  %v850_v1 = vld [vmem:[#allocation8 + $0xb0] sm:$0xf]  ;;  %v1291_v2 = vor.u32 %v963_v0, %v786_v63  ;;  %v979_v3 = vld [vmem:[#allocation8 + $0xb4] sm:$0xf0]  ;;  %v962_v4 = vld [vmem:[#allocation8 + $0x34] sm:$0xf] }
  0x27   :  { %416 = vmatpush.bf16.msrb.mxu1 %v1259_v39  ;;  %389 = vmatpush.bf16.msra.mxu3 %v1267_v47  ;;  %v788_v5 = vld [vmem:[#allocation8 + $0x38] sm:$0xf0]  ;;  %v1293_v6 = vor.u32 %v979_v3, %v850_v1  ;;  %v978_v8 = vld [vmem:[#allocation8 + $0xb4] sm:$0xf]  ;;  %v778_v11 = vld [vmem:[#allocation8 + $0x20] sm:$0xf] }
  0x28   :  { %v1295_v7 = vor.u32 %v962_v4, %v788_v5  ;;  %v852_v9 = vld [vmem:[#allocation8 + $0xb8] sm:$0xf0]  ;;  %v961_v12 = vld [vmem:[#allocation8 + $0x24] sm:$0xf0]  ;;  %v842_v14 = vld [vmem:[#allocation8 + $0xa0] sm:$0xf] }
  0x29   :  { %v1298_v10 = vor.u32 %v978_v8, %v852_v9  ;;  %v1303_v13 = vor.u32 %v961_v12, %v778_v11  ;;  %v977_v15 = vld [vmem:[#allocation8 + $0xa4] sm:$0xf0]  ;;  %v960_v17 = vld [vmem:[#allocation8 + $0x24] sm:$0xf]  ;;  %v780_v19 = vld [vmem:[#allocation8 + $0x28] sm:$0xf0] }
  0x2a   :  { %403 = vmatpush.bf16.msrb.mxu0 %v1270_v51  ;;  %376 = vmatpush.bf16.msra.mxu2 %v1276_v57  ;;  %v1305_v18 = vor.u32 %v977_v15, %v842_v14  ;;  %v976_v21 = vld [vmem:[#allocation8 + $0xa4] sm:$0xf]  ;;  %v844_v22 = vld [vmem:[#allocation8 + $0xa8] sm:$0xf0]  ;;  %v1308_v23 = vor.u32 %v960_v17, %v780_v19  ;;  %v770_v27 = vld [vmem:[#allocation8 + $0x10] sm:$0xf] }
  0x2b   :  { %417 = vmatpush.bf16.msrb.mxu1 %v1273_v54  ;;  %390 = vmatpush.bf16.msra.mxu3 %v1279_v60  ;;  %v1310_v24 = vor.u32 %v976_v21, %v844_v22  ;;  %v959_v28 = vld [vmem:[#allocation8 + $0x14] sm:$0xf0]  ;;  %v834_v29 = vld [vmem:[#allocation8 + $0x90] sm:$0xf]  ;;  %v958_v33 = vld [vmem:[#allocation8 + $0x14] sm:$0xf] }
  0x2c   :  { %v1315_v31 = vor.u32 %v959_v28, %v770_v27  ;;  %v975_v32 = vld [vmem:[#allocation8 + $0x94] sm:$0xf0]  ;;  %v772_v36 = vld [vmem:[#allocation8 + $0x18] sm:$0xf0]  ;;  %v974_v40 = vld [vmem:[#allocation8 + $0x94] sm:$0xf] }
  0x2d   :  { %v1317_v37 = vor.u32 %v975_v32, %v834_v29  ;;  %v1319_v38 = vor.u32 %v958_v33, %v772_v36  ;;  %v836_v41 = vld [vmem:[#allocation8 + $0x98] sm:$0xf0]  ;;  %v762_v44 = vld [vmem:[#allocation8] sm:$0xf]  ;;  %v957_v45 = vld [vmem:[#allocation8 + $0x4] sm:$0xf0] }
  0x2e   :  { %404 = vmatpush.bf16.msrb.mxu0 %v1282_v61  ;;  %377 = vmatpush.bf16.msra.mxu2 %v1291_v2  ;;  %v1322_v42 = vor.u32 %v974_v40, %v836_v41  ;;  %v826_v46 = vld [vmem:[#allocation8 + $0x80] sm:$0xf]  ;;  %v1327_v48 = vor.u32 %v957_v45, %v762_v44  ;;  %v973_v49 = vld [vmem:[#allocation8 + $0x84] sm:$0xf0]  ;;  %v956_v50 = vld [vmem:[#allocation8 + $0x4] sm:$0xf] }
  0x2f   :  { %418 = vmatpush.bf16.msrb.mxu1 %v1285_v62  ;;  %391 = vmatpush.bf16.msra.mxu3 %v1293_v6  ;;  %v764_v52 = vld [vmem:[#allocation8 + $0x8] sm:$0xf0]  ;;  %v1329_v53 = vor.u32 %v973_v49, %v826_v46  ;;  %v972_v56 = vld [vmem:[#allocation8 + $0x84] sm:$0xf]  ;;  %v111_v63 = vld [vmem:[#allocation7] sm:$0x3] }
  0x30   :  { %v1331_v55 = vor.u32 %v956_v50, %v764_v52  ;;  %v828_v58 = vld [vmem:[#allocation8 + $0x88] sm:$0xf0]  ;;  %v113_v3 = vperm.slane %v111_v63, 0  ;;  %v114_v4 = vperm.slane %v111_v63, 1  ;;  %v1003_v29 = vld [vmem:[#allocation10 + $0x78] sm:$0xff]  ;;  %v1002_v32 = vld [vmem:[#allocation10 + $0x70] sm:$0xff] }
  0x31   :  { %v1334_v59 = vor.u32 %v972_v56, %v828_v58  ;;  %s725_s29 = sshll.u32 %s1176_s28, 4  ;;  %s727_s11 = sshll.u32 %s1438_s7, 4  ;;  %s726_s29 = int_to_ptr.vmem [resolvable:$true] %s725_s29  ;;  %s728_s11 = int_to_ptr.hbm [resolvable:$true] %s727_s11 }
  0x32   :  { %405 = vmatpush.bf16.msrb.mxu0 %v1295_v7  ;;  %378 = vmatpush.bf16.msra.mxu2 %v1303_v13 }
  0x33   :  { %419 = vmatpush.bf16.msrb.mxu1 %v1298_v10  ;;  %392 = vmatpush.bf16.msra.mxu3 %v1305_v18 }
  0x36   :  { %406 = vmatpush.bf16.msrb.mxu0 %v1308_v23  ;;  %379 = vmatpush.bf16.msra.mxu2 %v1315_v31 }
  0x37   :  { %420 = vmatpush.bf16.msrb.mxu1 %v1310_v24  ;;  %393 = vmatpush.bf16.msra.mxu3 %v1317_v37 }
  0x3a   :  { %407 = vmatpush.bf16.msrb.mxu0 %v1319_v38  ;;  %380 = vmatpush.bf16.msra.mxu2 %v1327_v48 }
  0x3b   :  { %421 = vmatpush.bf16.msrb.mxu1 %v1322_v42  ;;  %394 = vmatpush.bf16.msra.mxu3 %v1329_v53 }
  0x3e   :  { %435 = vmatpush.bf16.msrb.mxu2 %v1241_v16  ;;  %408 = vmatpush.bf16.msrb.mxu0 %v1331_v55 }
  0x3f   :  { %422 = vmatpush.bf16.msrb.mxu1 %v1334_v59  ;;  %449 = vmatpush.bf16.msrb.mxu3 %v1243_v20 }
  0x42   :  { %463 = vmatpush.bf16.msra.mxu0 %v1246_v25  ;;  %436 = vmatpush.bf16.msrb.mxu2 %v1251_v30 }
  0x43   :  { %477 = vmatpush.bf16.msra.mxu1 %v1248_v26  ;;  %450 = vmatpush.bf16.msrb.mxu3 %v1254_v34 }
  0x46   :  { %464 = vmatpush.bf16.msra.mxu0 %v1256_v35  ;;  %437 = vmatpush.bf16.msrb.mxu2 %v1263_v43 }
  0x47   :  { %478 = vmatpush.bf16.msra.mxu1 %v1259_v39  ;;  %451 = vmatpush.bf16.msrb.mxu3 %v1267_v47 }
  0x4a   :  { %465 = vmatpush.bf16.msra.mxu0 %v1270_v51  ;;  %438 = vmatpush.bf16.msrb.mxu2 %v1276_v57 }
  0x4b   :  { %479 = vmatpush.bf16.msra.mxu1 %v1273_v54  ;;  %452 = vmatpush.bf16.msrb.mxu3 %v1279_v60 }
  0x4e   :  { %466 = vmatpush.bf16.msra.mxu0 %v1282_v61  ;;  %439 = vmatpush.bf16.msrb.mxu2 %v1291_v2 }
  0x4f   :  { %480 = vmatpush.bf16.msra.mxu1 %v1285_v62  ;;  %453 = vmatpush.bf16.msrb.mxu3 %v1293_v6 }
  0x52   :  { %467 = vmatpush.bf16.msra.mxu0 %v1295_v7  ;;  %440 = vmatpush.bf16.msrb.mxu2 %v1303_v13 }
  0x53   :  { %481 = vmatpush.bf16.msra.mxu1 %v1298_v10  ;;  %454 = vmatpush.bf16.msrb.mxu3 %v1305_v18 }
  0x56   :  { %468 = vmatpush.bf16.msra.mxu0 %v1308_v23  ;;  %441 = vmatpush.bf16.msrb.mxu2 %v1315_v31 }
  0x57   :  { %482 = vmatpush.bf16.msra.mxu1 %v1310_v24  ;;  %455 = vmatpush.bf16.msrb.mxu3 %v1317_v37 }
  0x5a   :  { %469 = vmatpush.bf16.msra.mxu0 %v1319_v38  ;;  %442 = vmatpush.bf16.msrb.mxu2 %v1327_v48 }
  0x5b   :  { %483 = vmatpush.bf16.msra.mxu1 %v1322_v42  ;;  %456 = vmatpush.bf16.msrb.mxu3 %v1329_v53 }
  0x5e   :  { %470 = vmatpush.bf16.msra.mxu0 %v1331_v55 }
  0x5f   :  { %484 = vmatpush.bf16.msra.mxu1 %v1334_v59 }
  0x9e   :  { %v150_v0 = vpop.f32.mrf.mxu0 }
  0x9f   :  { %v151_v5 = vadd.f32 %v150_v0, %v113_v3 }
  0xa1   :  { %v164_v1 = vpop.f32.mrf.mxu1  ;;  %v169_v15 = vmax.f32 %v151_v5, 0.0  ;;  %v1000_v5 = vld [vmem:[#allocation10 + $0x60] sm:$0xff] }
  0xa2   :  { %v165_v8 = vadd.f32 %v164_v1, %v114_v4 }
  0xa4   :  { %v170_v19 = vmax.f32 %v165_v8, 0.0  ;;  %v993_v8 = vld [vmem:[#allocation10 + $0x28] sm:$0xff] }
  0xa6   :  { %v152_v9 = vpop.f32.mrf.mxu0 }
  0xa7   :  { %v153_v11 = vadd.f32 %v152_v9, %v113_v3  ;;  %v1001_v3 = vld [vmem:[#allocation10 + $0x68] sm:$0xff]  ;;  %v999_v9 = vld [vmem:[#allocation10 + $0x58] sm:$0xff] }
  0xa9   :  { %v166_v12 = vpop.f32.mrf.mxu1  ;;  %v171_v17 = vmax.f32 %v153_v11, 0.0  ;;  %v992_v11 = vld [vmem:[#allocation10 + $0x20] sm:$0xff] }
  0xaa   :  { %v167_v14 = vadd.f32 %v166_v12, %v114_v4  ;;  %v994_v4 = vld [vmem:[#allocation10 + $0x30] sm:$0xff] }
  0xab   :  { %v173_v22 = vpack.c.bf16 %v171_v17, %v169_v15  ;;  %v998_v12 = vld [vmem:[#allocation10 + $0x50] sm:$0xff]  ;;  %v997_v15 = vld [vmem:[#allocation10 + $0x48] sm:$0xff] }
  0xac   :  { %v172_v21 = vmax.f32 %v167_v14, 0.0  ;;  %v991_v14 = vld [vmem:[#allocation10 + $0x18] sm:$0xff]  ;;  %v990_v17 = vld [vmem:[#allocation10 + $0x10] sm:$0xff] }
  0xad   :  { %381 = vmatmul.bf16.vlgmr.msra.gmra.mxu2 %v173_v22  ;;  %409 = vmatmul.bf16.vlgmr.msrb.gmra.mxu0 %v173_v22  ;;  %v988_v22 = vld [vmem:[#allocation10] sm:$0xff] }
  0xae   :  { %v174_v27 = vpack.c.bf16 %v172_v21, %v170_v19  ;;  %497 = vmatpush.bf16.msra.mxu2 %v1241_v16  ;;  %525 = vmatpush.bf16.msrb.mxu0 %v1246_v25  ;;  %v207_v16 = vld [vmem:[%s1435_s4] sm:$0x3]  ;;  %v996_v19 = vld [vmem:[#allocation10 + $0x40] sm:$0xff] }
  0xaf   :  { %v1406_v25 = vperm.slane %v207_v16, 1  ;;  %v989_v21 = vld [vmem:[#allocation10 + $0x8] sm:$0xff] }
  0xb0   :  { %395 = vmatmul.bf16.vlgmr.msra.gmra.mxu3 %v174_v27  ;;  %423 = vmatmul.bf16.vlgmr.msrb.gmra.mxu1 %v174_v27 }
  0xb1   :  { %511 = vmatpush.bf16.msra.mxu3 %v1243_v20  ;;  %539 = vmatpush.bf16.msrb.mxu1 %v1248_v26 }
  0xb2   :  { %498 = vmatpush.bf16.msra.mxu2 %v1251_v30  ;;  %526 = vmatpush.bf16.msrb.mxu0 %v1256_v35  ;;  %v1409_v35 = vperm.slane %v207_v16, 0 }
  0xb5   :  { %512 = vmatpush.bf16.msra.mxu3 %v1254_v34  ;;  %540 = vmatpush.bf16.msrb.mxu1 %v1259_v39 }
  0xb6   :  { %499 = vmatpush.bf16.msra.mxu2 %v1263_v43  ;;  %527 = vmatpush.bf16.msrb.mxu0 %v1270_v51 }
  0xb9   :  { %513 = vmatpush.bf16.msra.mxu3 %v1267_v47  ;;  %541 = vmatpush.bf16.msrb.mxu1 %v1273_v54 }
  0xba   :  { %500 = vmatpush.bf16.msra.mxu2 %v1276_v57  ;;  %528 = vmatpush.bf16.msrb.mxu0 %v1282_v61 }
  0xbd   :  { %514 = vmatpush.bf16.msra.mxu3 %v1279_v60  ;;  %542 = vmatpush.bf16.msrb.mxu1 %v1285_v62 }
  0xbe   :  { %501 = vmatpush.bf16.msra.mxu2 %v1291_v2  ;;  %529 = vmatpush.bf16.msrb.mxu0 %v1295_v7 }
  0xc1   :  { %515 = vmatpush.bf16.msra.mxu3 %v1293_v6  ;;  %543 = vmatpush.bf16.msrb.mxu1 %v1298_v10 }
  0xc2   :  { %502 = vmatpush.bf16.msra.mxu2 %v1303_v13  ;;  %530 = vmatpush.bf16.msrb.mxu0 %v1308_v23 }
  0xc5   :  { %516 = vmatpush.bf16.msra.mxu3 %v1305_v18  ;;  %544 = vmatpush.bf16.msrb.mxu1 %v1310_v24 }
  0xc6   :  { %503 = vmatpush.bf16.msra.mxu2 %v1315_v31  ;;  %531 = vmatpush.bf16.msrb.mxu0 %v1319_v38  ;;  %v995_v31 = vld [vmem:[#allocation10 + $0x38] sm:$0xff] }
  0xc9   :  { %517 = vmatpush.bf16.msra.mxu3 %v1317_v37  ;;  %545 = vmatpush.bf16.msrb.mxu1 %v1322_v42 }
  0xca   :  { %504 = vmatpush.bf16.msra.mxu2 %v1327_v48  ;;  %532 = vmatpush.bf16.msrb.mxu0 %v1331_v55 }
  0xcd   :  { %518 = vmatpush.bf16.msra.mxu3 %v1329_v53  ;;  %546 = vmatpush.bf16.msrb.mxu1 %v1334_v59 }
 0x12a   :  { %v410_v20 = vpop.f32.mrf.mxu0 }
 0x12b   :  { %v411_v30 = vadd.f32 %v410_v20, %v1406_v25 }
 0x12d   :  { %v424_v26 = vpop.f32.mrf.mxu1 }
 0x12e   :  { %v425_v47 = vadd.f32 %v424_v26, %v411_v30 }
 0x130   :  { %v382_v34 = vpop.f32.mrf.mxu2  ;;  %v430_v61 = vmax.f32 %v425_v47, 0.0 }
 0x131   :  { %v383_v57 = vadd.f32 %v382_v34, %v1409_v35 }
 0x132   :  { %v412_v43 = vpop.f32.mrf.mxu0 }
 0x133   :  { %v396_v39 = vpop.f32.mrf.mxu3  ;;  %v413_v51 = vadd.f32 %v412_v43, %v1406_v25 }
 0x134   :  { %v397_v6 = vadd.f32 %v396_v39, %v383_v57 }
 0x135   :  { %v426_v54 = vpop.f32.mrf.mxu1 }
 0x136   :  { %v427_v60 = vadd.f32 %v426_v54, %v413_v51  ;;  %v429_v23 = vmax.f32 %v397_v6, 0.0 }
 0x138   :  { %v432_v62 = vmax.f32 %v427_v60, 0.0  ;;  %v384_v2 = vpop.f32.mrf.mxu2 }
 0x139   :  { %v385_v10 = vadd.f32 %v384_v2, %v1409_v35 }
 0x13a   :  { %v434_v7 = vpack.c.bf16 %v432_v62, %v430_v61 }
 0x13b   :  { %v398_v13 = vpop.f32.mrf.mxu3 }
 0x13c   :  { %v399_v18 = vadd.f32 %v398_v13, %v385_v10  ;;  %457 = vmatmul.bf16.vlgmr.msrb.gmra.mxu3 %v434_v7  ;;  %485 = vmatmul.bf16.vlgmr.msra.gmra.mxu1 %v434_v7 }
 0x13d   :  { %705 = vmatpush.bf16.msrb.mxu3 %v1003_v29 }
 0x13e   :  { %v431_v24 = vmax.f32 %v399_v18, 0.0 }
 0x140   :  { %v433_v28 = vpack.c.bf16 %v431_v24, %v429_v23 }
 0x141   :  { %706 = vmatpush.bf16.msrb.mxu3 %v1002_v32 }
 0x142   :  { %443 = vmatmul.bf16.vlgmr.msrb.gmra.mxu2 %v433_v28  ;;  %471 = vmatmul.bf16.vlgmr.msra.gmra.mxu0 %v433_v28 }
 0x143   :  { %691 = vmatpush.bf16.msrb.mxu2 %v995_v31 }
 0x145   :  { %707 = vmatpush.bf16.msrb.mxu3 %v1001_v3 }
 0x147   :  { %692 = vmatpush.bf16.msrb.mxu2 %v994_v4 }
 0x149   :  { %708 = vmatpush.bf16.msrb.mxu3 %v1000_v5 }
 0x14b   :  { %693 = vmatpush.bf16.msrb.mxu2 %v993_v8 }
 0x14d   :  { %709 = vmatpush.bf16.msrb.mxu3 %v999_v9 }
 0x14f   :  { %694 = vmatpush.bf16.msrb.mxu2 %v992_v11 }
 0x151   :  { %710 = vmatpush.bf16.msrb.mxu3 %v998_v12 }
 0x153   :  { %695 = vmatpush.bf16.msrb.mxu2 %v991_v14 }
 0x155   :  { %711 = vmatpush.bf16.msrb.mxu3 %v997_v15 }
 0x157   :  { %696 = vmatpush.bf16.msrb.mxu2 %v990_v17 }
 0x159   :  { %712 = vmatpush.bf16.msrb.mxu3 %v996_v19 }
 0x15b   :  { %697 = vmatpush.bf16.msrb.mxu2 %v989_v21 }
 0x15f   :  { %698 = vmatpush.bf16.msrb.mxu2 %v988_v22 }
 0x1b9   :  { %v486_v33 = vpop.f32.mrf.mxu1 }
 0x1bf   :  { %v472_v36 = vpop.f32.mrf.mxu0  ;;  %v458_v38 = vpop.f32.mrf.mxu3 }
 0x1c0   :  { %v473_v37 = vadd.f32 %v472_v36, %v1406_v25 }
 0x1c1   :  { %v488_v45 = vpop.f32.mrf.mxu1 }
 0x1c2   :  { %v487_v42 = vadd.f32 %v486_v33, %v473_v37 }
 0x1c4   :  { %v492_v49 = vmax.f32 %v487_v42, 0.0 }
 0x1c5   :  { %v444_v40 = vpop.f32.mrf.mxu2 }
 0x1c6   :  { %v445_v46 = vadd.f32 %v444_v40, %v1409_v35 }
 0x1c7   :  { %v474_v41 = vpop.f32.mrf.mxu0  ;;  %v460_v58 = vpop.f32.mrf.mxu3 }
 0x1c8   :  { %v475_v44 = vadd.f32 %v474_v41, %v1406_v25  ;;  %v459_v53 = vadd.f32 %v458_v38, %v445_v46 }
 0x1ca   :  { %v489_v48 = vadd.f32 %v488_v45, %v475_v44  ;;  %v491_v63 = vmax.f32 %v459_v53, 0.0 }
 0x1cc   :  { %v494_v50 = vmax.f32 %v489_v48, 0.0 }
 0x1cd   :  { %v446_v52 = vpop.f32.mrf.mxu2 }
 0x1ce   :  { %v496_v55 = vpack.c.bf16 %v494_v50, %v492_v49  ;;  %v447_v56 = vadd.f32 %v446_v52, %v1409_v35 }
 0x1d0   :  { %v461_v59 = vadd.f32 %v460_v58, %v447_v56  ;;  %519 = vmatmul.bf16.vlgmr.msra.gmra.mxu3 %v496_v55  ;;  %547 = vmatmul.bf16.vlgmr.msrb.gmra.mxu1 %v496_v55 }
 0x1d2   :  { %v493_v0 = vmax.f32 %v461_v59, 0.0 }
 0x1d4   :  { %v495_v1 = vpack.c.bf16 %v493_v0, %v491_v63 }
 0x1d6   :  { %505 = vmatmul.bf16.vlgmr.msra.gmra.mxu2 %v495_v1  ;;  %533 = vmatmul.bf16.vlgmr.msrb.gmra.mxu0 %v495_v1 }
 0x24d   :  { %v548_v27 = vpop.f32.mrf.mxu1 }
 0x253   :  { %v534_v16 = vpop.f32.mrf.mxu0  ;;  %v520_v26 = vpop.f32.mrf.mxu3 }
 0x254   :  { %v535_v20 = vadd.f32 %v534_v16, %v1406_v25 }
 0x255   :  { %v550_v47 = vpop.f32.mrf.mxu1 }
 0x256   :  { %v549_v39 = vadd.f32 %v548_v27, %v535_v20 }
 0x258   :  { %v554_v57 = vmax.f32 %v549_v39, 0.0 }
 0x259   :  { %v506_v30 = vpop.f32.mrf.mxu2 }
 0x25a   :  { %v507_v51 = vadd.f32 %v506_v30, %v1409_v35 }
 0x25b   :  { %v536_v34 = vpop.f32.mrf.mxu0  ;;  %v522_v7 = vpop.f32.mrf.mxu3 }
 0x25c   :  { %v537_v43 = vadd.f32 %v536_v34, %v1406_v25  ;;  %v521_v62 = vadd.f32 %v520_v26, %v507_v51  ;;  %v1014_v25 = vld [vmem:[%s1437_s6] ss:$0 sm:$0xff] }
 0x25e   :  { %v551_v54 = vadd.f32 %v550_v47, %v537_v43  ;;  %v553_v13 = vmax.f32 %v521_v62, 0.0 }
 0x260   :  { %v556_v60 = vmax.f32 %v551_v54, 0.0 }
 0x261   :  { %v508_v61 = vpop.f32.mrf.mxu2 }
 0x262   :  { %v558_v2 = vpack.c.bf16 %v556_v60, %v554_v57  ;;  %v509_v6 = vadd.f32 %v508_v61, %v1409_v35 }
 0x264   :  { %v523_v10 = vadd.f32 %v522_v7, %v509_v6  ;;  %713 = vmatmul.bf16.vlgmr.msrb.gmra.mxu3 %v558_v2 }
 0x266   :  { %v555_v18 = vmax.f32 %v523_v10, 0.0 }
 0x268   :  { %v557_v23 = vpack.c.bf16 %v555_v18, %v553_v13 }
 0x26a   :  { %699 = vmatmul.bf16.vlgmr.msrb.gmra.mxu2 %v557_v23 }
 0x2e7   :  { %v714_v24 = vpop.f32.mrf.mxu3 }
 0x2ed   :  { %v700_v28 = vpop.f32.mrf.mxu2 }
 0x2ee   :  { %v701_v29 = vadd.f32 %v1014_v25, %v700_v28 }
 0x2ef   :  { %v716_v33 = vpop.f32.mrf.mxu3 }
 0x2f0   :  { %v715_v31 = vadd.f32 %v714_v24, %v701_v29 }
 0x2f2   :  { %719 = vst [vmem:[#allocation11] sm:$0xff] %v715_v31 }
 0x2f5   :  { %v702_v32 = vpop.f32.mrf.mxu2 }
 0x2f6   :  { %v703_v35 = vadd.f32 %v1014_v25, %v702_v32 }
 0x2f8   :  { %v717_v36 = vadd.f32 %v716_v33, %v703_v35 }
 0x2fa   :  { %720 = vst [vmem:[#allocation11 + $0x8] sm:$0xff] %v717_v36 }
 0x2fb   :  { %733 = dma.vmem_to_hbm [thread:$0]  %s726_s29, 256, %s728_s11, [#allocation4], %s1168_s9, %s1168_s9, %s1169_s10  }
 0x2fc   :  { %1165 = dma.done.wait [#allocation4], 256  }
 0x2fd   :  { %1166 = vsyncadd [#allocation4], 4294967040 }
 0x2fe   :  { %738 = vsyncpa [#allocation3], 1 }
 0x2ff   :  { %739 = vsyncpa [#allocation6], 1 }
 0x300   :  { %740 = vsyncpa [#allocation9], 1 }
 0x301   :  { %741 = vsyncpa [#allocation4], 1 }

</bundles_post_ra>
